<compile_context>
chip_gen: v7x
topology: tpu7x:2x2x1
jax: 0.10.0
libtpu: 0.0.40
codegen_flags: <defaults>
</compile_context>

<pallas_src>
import jax
import jax.numpy as jnp
from jax.experimental import pallas as pl
from jax.experimental.pallas import tpu as pltpu


def _round_up(v, m):
    return (v + m - 1) // m * m


def _vmem_limit_bytes():
    """Scoped-VMEM limit sized per TPU generation (3/4 of physical VMEM)."""
    cap = None
    try:
        info = pltpu.get_tpu_info()
        cap = getattr(info, "vmem_capacity_bytes", None)
    except Exception:
        cap = None
    if not cap:
        cap = 64 << 20  # conservative fallback (v7x physical VMEM)
    return int(min(cap * 3 // 4, 100 << 20))


def _choose_tiles(N, C_in, C_out, S, itemsize, vmem_limit):
    """Pick (batch_tile BN, lane_tile ts).

    Targets ~4 MiB of HBM traffic per grid step (the op is purely
    bandwidth-bound; weights are resident so traffic/step is
    (C_in + C_out) * BN * ts * itemsize), while keeping the double-buffered
    input + output tiles inside half the scoped-VMEM budget.
    """
    cin_p = _round_up(C_in, 8)            # channels live on sublanes (pad to 8)
    cout_p = _round_up(C_out, 8)
    hbm_per_lane = (C_in + C_out) * itemsize           # HBM bytes / lane / n
    vmem_per_lane = 2 * (cin_p + cout_p) * itemsize    # dbl-buffered VMEM / lane / n

    target_step_bytes = 4 << 20
    vmem_budget = vmem_limit // 2          # leave headroom for Mosaic scratch

    ts = _round_up(max(target_step_bytes // hbm_per_lane, 128), 128)
    ts = min(ts, _round_up(S, 128))                                   # never exceed S
    ts = min(ts, max(128, (vmem_budget // vmem_per_lane) // 128 * 128))  # fit VMEM

    # Small-S / large-N case: process several batch elements per grid step so
    # per-step bytes stay MiB-scale instead of one tiny step per n.
    bn = 1
    if ts >= S:
        want = max(1, target_step_bytes // (hbm_per_lane * ts))
        want = min(int(want), N, 8)        # cap the static unroll in the kernel
        for d in range(want, 0, -1):       # largest divisor of N not above `want`
            if N % d == 0 and d * ts * vmem_per_lane <= vmem_budget:
                bn = d
                break
    return bn, ts


def _outconv_kernel(x_ref, w_ref, b_ref, o_ref):
    # x_ref: (BN, C_in, TS)  w_ref: (C_out, C_in)  b_ref: (C_out, 1)
    # o_ref: (BN, C_out, TS) -- TS is a multiple of 128 -> lane-dense stores
    # (only the final partial block, if any, uses a masked writeback).
    w = w_ref[...]
    b = b_ref[...].astype(jnp.float32)
    for i in range(x_ref.shape[0]):        # BN is a small static constant (<= 8)
        acc = jnp.dot(w, x_ref[i], preferred_element_type=jnp.float32)
        o_ref[i] = (acc + b).astype(o_ref.dtype)


def outconv_pallas(x, weight, bias, *, tile_s=None, batch_tile=None):
    """1x1x1 Conv3d forward, native NCDHW layout.

    x:      (N, C_in, D, H, W)   (NCDHW, matching PyTorch)
    weight: (C_out, C_in, 1, 1, 1)
    bias:   (C_out,)
    returns (N, C_out, D, H, W)

    tile_s / batch_tile override the auto-chosen lane / batch tiles (testing).
    """
    N, C_in, D, H, W = x.shape
    C_out = weight.shape[0]
    S = D * H * W

    # Zero-copy reshapes: channels stay on sublanes, spatial goes on lanes.
    x3 = x.reshape(N, C_in, S)
    w2 = weight.reshape(C_out, C_in)
    b2 = bias.reshape(C_out, 1)

    vmem_limit = _vmem_limit_bytes()
    bn, ts = _choose_tiles(N, C_in, C_out, S, x.dtype.itemsize, vmem_limit)
    if tile_s is not None:
        ts = max(128, _round_up(min(tile_s, _round_up(S, 128)), 128))
    if batch_tile is not None:
        bn = batch_tile
    if N % bn != 0:
        bn = 1

    # Ragged S: no wrapper pad/slice -- the last block is partial and Pallas
    # masks its writeback (the contraction is over channels/sublanes, so the
    # overhang lanes never contaminate valid output lanes).
    grid = (N // bn, pl.cdiv(S, ts))

    out = pl.pallas_call(
        _outconv_kernel,
        out_shape=jax.ShapeDtypeStruct((N, C_out, S), x.dtype),
        grid_spec=pltpu.PrefetchScalarGridSpec(
            num_scalar_prefetch=0,
            grid=grid,
            in_specs=[
                # x tile: (BN, C_in, ts), streamed.
                pl.BlockSpec((bn, C_in, ts), lambda n, s: (n, 0, s)),
                # weight / bias: constant index_map -> DMA'd once, resident.
                pl.BlockSpec((C_out, C_in), lambda n, s: (0, 0)),
                pl.BlockSpec((C_out, 1), lambda n, s: (0, 0)),
            ],
            out_specs=pl.BlockSpec((bn, C_out, ts), lambda n, s: (n, 0, s)),
        ),
        compiler_params=pltpu.CompilerParams(
            # Both axes independent -> shard across TCs on v7x megacore.
            dimension_semantics=("parallel", "parallel"),
            # Per-generation scoped VMEM so large tiles never hit the
            # 16/32 MiB defaults (v5e/v6e) or overflow v7x's 64 MiB physical.
            vmem_limit_bytes=vmem_limit,
        ),
    )(x3, w2, b2)

    return out.reshape(N, C_out, D, H, W)


def init_outconv_params(key, in_channels, out_channels):
    """Deterministic init mirroring nn.Conv3d defaults (uniform +-1/sqrt(fan_in))."""
    kw, kb = jax.random.split(key)
    fan_in = in_channels * 1 * 1 * 1
    bound = 1.0 / jnp.sqrt(fan_in)
    weight = jax.random.uniform(
        kw, (out_channels, in_channels, 1, 1, 1),
        minval=-bound, maxval=bound, dtype=jnp.float32)
    bias = jax.random.uniform(
        kb, (out_channels,), minval=-bound, maxval=bound, dtype=jnp.float32)
    return weight, bias


def _reference(x, weight, bias):
    # Exact f32 VPU reference (no MXU rounding): broadcast multiply + sum.
    C_out, C_in = weight.shape[0], weight.shape[1]
    w2 = weight.reshape(C_out, C_in)
    y = jnp.sum(x[:, None, :, :, :, :] * w2[None, :, :, None, None, None], axis=2)
    return y + bias.reshape(1, C_out, 1, 1, 1)


if __name__ == "__main__":
    key = jax.random.PRNGKey(0)
    k_x, k_p, k_x2, k_x3 = jax.random.split(key, 4)

    N, C_in, C_out = 2, 4, 3
    weight, bias = init_outconv_params(k_p, C_in, C_out)

    # Case 1: spatial size a multiple of 128 (S = 4*8*8 = 256); auto tiles
    # cover all of S in one step with both batch elements batched together.
    D, H, W = 4, 8, 8
    x = jax.random.normal(k_x, (N, C_in, D, H, W), dtype=jnp.float32)
    y = jax.block_until_ready(outconv_pallas(x, weight, bias))
    y_ref = _reference(x, weight, bias)
    assert y.shape == (N, C_out, D, H, W)
    assert jnp.allclose(y, y_ref, atol=1e-4, rtol=1e-4)

    # Case 2: ragged spatial size (S = 3*7*5 = 105) -- single partial block,
    # masked writeback, no wrapper pad/slice.
    D2, H2, W2 = 3, 7, 5
    x2 = jax.random.normal(k_x2, (N, C_in, D2, H2, W2), dtype=jnp.float32)
    y2 = jax.block_until_ready(outconv_pallas(x2, weight, bias))
    y2_ref = _reference(x2, weight, bias)
    assert y2.shape == (N, C_out, D2, H2, W2)
    assert jnp.allclose(y2, y2_ref, atol=1e-4, rtol=1e-4)

    # Case 3: force a small lane tile (S = 4*9*5 = 180, ts = 128) to exercise
    # a multi-block spatial grid whose final block is partial (overhang path).
    D3, H3, W3 = 4, 9, 5
    x3 = jax.random.normal(k_x3, (N, C_in, D3, H3, W3), dtype=jnp.float32)
    y3 = jax.block_until_ready(
        outconv_pallas(x3, weight, bias, tile_s=128, batch_tile=1))
    y3_ref = _reference(x3, weight, bias)
    assert y3.shape == (N, C_out, D3, H3, W3)
    assert jnp.allclose(y3, y3_ref, atol=1e-4, rtol=1e-4)

    print("KERNEL_OK")
</pallas_src>

<mosaic_0001>
module attributes {stable_mosaic.version = 11 : i64} {
  func.func @_outconv_kernel(%arg0: i32, %arg1: i32, %arg2: memref<2x4x256xf32, #tpu.memory_space<vmem>>, %arg3: memref<3x4xf32, #tpu.memory_space<vmem>>, %arg4: memref<3x1xf32, #tpu.memory_space<vmem>>, %arg5: memref<2x3x256xf32, #tpu.memory_space<vmem>>) attributes {dimension_semantics = [#tpu.dimension_semantics<parallel>, #tpu.dimension_semantics<parallel>], iteration_bounds = array<i64: 1, 1>, scalar_prefetch = 0 : i64, scratch_operands = 0 : i64, tpu.core_type = #tpu.core_type<tc>, window_params = [{transform_indices = @transform_0, window_bounds = array<i64: 2, 4, 256>}, {pipeline_mode = #tpu.pipeline_mode<synchronous>, transform_indices = @transform_1, window_bounds = array<i64: 3, 4>}, {pipeline_mode = #tpu.pipeline_mode<synchronous>, transform_indices = @transform_2, window_bounds = array<i64: 3, 1>}, {transform_indices = @transform_3, window_bounds = array<i64: 2, 3, 256>}]} {
    %c0 = arith.constant 0 : index
    %c0_0 = arith.constant 0 : index
    %0 = vector.load %arg3[%c0, %c0_0] : memref<3x4xf32, #tpu.memory_space<vmem>>, vector<3x4xf32>
    %c0_1 = arith.constant 0 : index
    %c0_2 = arith.constant 0 : index
    %1 = vector.load %arg4[%c0_1, %c0_2] : memref<3x1xf32, #tpu.memory_space<vmem>>, vector<3x1xf32>
    %c0_3 = arith.constant 0 : index
    %c0_4 = arith.constant 0 : index
    %c0_5 = arith.constant 0 : index
    %2 = vector.load %arg2[%c0_3, %c0_4, %c0_5] : memref<2x4x256xf32, #tpu.memory_space<vmem>>, vector<1x4x256xf32>
    %3 = vector.shape_cast %2 : vector<1x4x256xf32> to vector<4x256xf32>
    %cst = arith.constant dense<0.000000e+00> : vector<3x256xf32>
    %4 = tpu.matmul %0, %3, %cst {dimension_numbers = #tpu.dot_dimension_numbers<[1], [0], [0], [1], [0, 0, 1, 1], [], []>} : vector<3x4xf32>, vector<4x256xf32>, vector<3x256xf32> -> vector<3x256xf32>
    %5 = vector.broadcast %1 : vector<3x1xf32> to vector<3x256xf32>
    %6 = arith.addf %4, %5 : vector<3x256xf32>
    %c0_6 = arith.constant 0 : index
    %c0_7 = arith.constant 0 : index
    %c0_8 = arith.constant 0 : index
    %7 = vector.load %arg5[%c0_6, %c0_7, %c0_8] : memref<2x3x256xf32, #tpu.memory_space<vmem>>, vector<1x3x256xf32>
    %8 = vector.shape_cast %7 : vector<1x3x256xf32> to vector<3x256xf32>
    %9 = vector.shape_cast %6 : vector<3x256xf32> to vector<1x3x256xf32>
    tpu.vector_store %arg5[%c0_6, %c0_7, %c0_8], %9 {strides = array<i32>} : memref<2x3x256xf32, #tpu.memory_space<vmem>>, vector<1x3x256xf32>,
    %c1 = arith.constant 1 : index
    %c0_9 = arith.constant 0 : index
    %c0_10 = arith.constant 0 : index
    %10 = vector.load %arg2[%c1, %c0_9, %c0_10] : memref<2x4x256xf32, #tpu.memory_space<vmem>>, vector<1x4x256xf32>
    %11 = vector.shape_cast %10 : vector<1x4x256xf32> to vector<4x256xf32>
    %cst_11 = arith.constant dense<0.000000e+00> : vector<3x256xf32>
    %12 = tpu.matmul %0, %11, %cst_11 {dimension_numbers = #tpu.dot_dimension_numbers<[1], [0], [0], [1], [0, 0, 1, 1], [], []>} : vector<3x4xf32>, vector<4x256xf32>, vector<3x256xf32> -> vector<3x256xf32>
    %13 = vector.broadcast %1 : vector<3x1xf32> to vector<3x256xf32>
    %14 = arith.addf %12, %13 : vector<3x256xf32>
    %c1_12 = arith.constant 1 : index
    %c0_13 = arith.constant 0 : index
    %c0_14 = arith.constant 0 : index
    %15 = vector.load %arg5[%c1_12, %c0_13, %c0_14] : memref<2x3x256xf32, #tpu.memory_space<vmem>>, vector<1x3x256xf32>
    %16 = vector.shape_cast %15 : vector<1x3x256xf32> to vector<3x256xf32>
    %17 = vector.shape_cast %14 : vector<3x256xf32> to vector<1x3x256xf32>
    tpu.vector_store %arg5[%c1_12, %c0_13, %c0_14], %17 {strides = array<i32>} : memref<2x3x256xf32, #tpu.memory_space<vmem>>, vector<1x3x256xf32>,
    return
  }
  func.func @transform_0(%arg0: i32, %arg1: i32) -> (i32, i32, i32) {
    %c0_i32 = arith.constant 0 : i32
    %c0_i32_0 = arith.constant 0 : i32
    return %arg0, %c0_i32, %arg1 : i32, i32, i32
  }
  func.func @transform_1(%arg0: i32, %arg1: i32) -> (i32, i32) {
    %c0_i32 = arith.constant 0 : i32
    %c0_i32_0 = arith.constant 0 : i32
    %c0_i32_1 = arith.constant 0 : i32
    return %c0_i32, %c0_i32_0 : i32, i32
  }
  func.func @transform_2(%arg0: i32, %arg1: i32) -> (i32, i32) {
    %c0_i32 = arith.constant 0 : i32
    %c0_i32_0 = arith.constant 0 : i32
    %c0_i32_1 = arith.constant 0 : i32
    return %c0_i32, %c0_i32_0 : i32, i32
  }
  func.func @transform_3(%arg0: i32, %arg1: i32) -> (i32, i32, i32) {
    %c0_i32 = arith.constant 0 : i32
    %c0_i32_0 = arith.constant 0 : i32
    return %arg0, %c0_i32, %arg1 : i32, i32, i32
  }
}

</mosaic_0001>

<bundles_post_ra>
// kernel: tpu_custom_call.1
= control target key start
LH: loop header
LB: loop body
LE: loop exit
PB: predicated region body
PF: predicated region fallthrough
CT: control target
= control target key end

     0   :  { %8 = vsyncpa [#allocation3], 0  ;;  %s252_s12 = smov [#allocation2]   ;;  %s301_s0 = inlined_call_operand.hbm [shape: f32[2,4,256], index: 0, kind: input, shape index: {}]   ;;  %s302_s1 = inlined_call_operand.vmem [shape: f32[3,4], index: 1, kind: input, shape index: {}]   ;;  %s303_s2 = inlined_call_operand.vmem [shape: f32[3,1], index: 2, kind: input, shape index: {}]   ;;  %s304_s3 = inlined_call_operand.vmem [shape: f32[2,3,256], index: 3, kind: output, shape index: {}]  }
   0x1   :  { %s14_s13 = sshll.u32 %s252_s12, 4  ;;  %s228_s16 = scalar_lea.hbm %s301_s0, 256  ;;  %s15_s13 = int_to_ptr.vmem [resolvable:$true] %s14_s13 }
   0x2   :  { %p229_p0 = scmp.ne.s32.totalorder %s301_s0, %s228_s16  ;;  %p232_p1 = scmp.lt.u32.totalorder %s228_s16, %s301_s0 }
   0x4   :  { %p234_p2 = pnand %p232_p1, %p229_p0 }
   0x6   :  { %237 = shalt.err (!%p234_p2)
}
   0x7   :  { %s238_s21 = scalar_lea.vmem %s15_s13, 256  ;;  %p243_p4 = scmp.lt.s32.totalorder %s15_s13, %s15_s13 }
   0x8   :  { %p239_p3 = scmp.ne.s32.totalorder %s15_s13, %s238_s21  ;;  %p244_p5 = scmp.lt.s32.totalorder %s238_s21, %s238_s21 }
   0xa   :  { %p245_p6 = por %p244_p5, %p243_p4 }
   0xc   :  { %p246_p7 = pnand %p245_p6, %p239_p3 }
   0xe   :  { %249 = shalt.err (!%p246_p7)
}
   0xf   :  { %s253_s22 = smov 128   ;;  %s254_s23 = smov 8  }
  0x10   :  { %20 = dma.hbm_to_vmem [thread:$0]  %s301_s0, 256, %s15_s13, [#allocation3], %s253_s22, %s253_s22, %s254_s23  }
  0x11   :  { %250 = dma.done.wait [#allocation3], 256  }
  0x12   :  { %251 = vsyncadd [#allocation3], 4294967040  ;;  %v255_v0 = vmov 0.0   ;;  %v256_v1 = vmov 0   ;;  %v30_v2 = vld [vmem:[#allocation2] sm:$0xff]  ;;  %vm42_vm0 = vcmask 1043456  }
  0x13   :  { %111 = vmatprep.mubr.f32.mxu0 %v255_v0  ;;  %195 = vmatprep.mubr.f32.mxu1 %v255_v0  ;;  %v124_v3 = vld [vmem:[#allocation2 + $0x8] sm:$0xff]  ;;  %v37_v4 = vcombine.high %v30_v2, %v30_v2  ;;  %v29_v6 = vld [vmem:[%s303_s2] sm:$0x7]  ;;  %vm38_vm1 = vcmask 31744  }
  0x14   :  { %225 = vset.pattern.permute.xlu0 %v256_v1  ;;  %v126_v5 = vcombine.high %v124_v3, %v124_v3  ;;  %v28_v7 = vld [vmem:[%s302_s1] sm:$0x7] }
  0x15   :  { %33 = vperm.xlu0 %225, %v29_v6   ;;  %213 = vmatprep.subr.msk.mxu0 %vm42_vm0, %v37_v4 }
  0x16   :  { %216 = vmatprep.subr.msk.mxu1 %vm42_vm0, %v126_v5  ;;  %214 = vmatpush1.msk.msra.mxu0 %vm42_vm0, %v30_v2 }
  0x17   :  { %217 = vmatpush1.msk.msra.mxu1 %vm42_vm0, %v124_v3  ;;  %215 = vmatmul.mubr.msk.f32.vlgmr.msra.gmra.mrb[0].mxu0 %vm38_vm1, %v28_v7 }
  0x18   :  { %218 = vmatmul.mubr.msk.f32.vlgmr.msra.gmra.mrb[0].mxu1 %vm38_vm1, %v28_v7 }
  0x94   :  { %v34_v8 = vpop.permute.xlu0 %33 }
  0xea   :  { %v113_v9 = vpop.f32.mrb[0].mxu0 }
  0xeb   :  { %v197_v10 = vpop.f32.mrb[0].mxu1  ;;  %v114_v11 = vadd.f32 %v113_v9, %v34_v8  ;;  %v115_v13 = vpop.f32.mrb[1].mxu0 }
  0xec   :  { %v198_v12 = vadd.f32 %v197_v10, %v34_v8  ;;  %v199_v14 = vpop.f32.mrb[1].mxu1  ;;  %v116_v15 = vadd.f32 %v115_v13, %v34_v8 }
  0xed   :  { %v200_v16 = vadd.f32 %v199_v14, %v34_v8 }
  0xee   :  { %v120_v17 = vcombine.low %v114_v11, %v116_v15 }
  0xef   :  { %v204_v18 = vcombine.low %v198_v12, %v200_v16 }
  0xf0   :  { %122 = vst [vmem:[%s304_s3] sm:$0x77] %v120_v17 }
  0xf1   :  { %219 = vst [vmem:[%s304_s3 + $0x8] sm:$0x77] %v204_v18 }
  0xf2   :  { %212 = vsyncpa [#allocation3], 1 }

</bundles_post_ra>
